<compile_context>
chip_gen: v7x
topology: tpu7x:2x2x1
jax: 0.10.0
libtpu: 0.0.40
codegen_flags: <defaults>
</compile_context>

<pallas_src>
import math

import jax
import jax.numpy as jnp
from jax.experimental import pallas as pl
from jax.experimental.pallas import tpu as pltpu

LANES = 512                 # lane-dense last dim (multiple of 128)
_SUBLANES = 8
_F32_BYTES = 4
# Headroom for in-kernel f32 temporaries (diffs, abs, squares, iota/mask,
# dtype casts), counted as full-tile equivalents when sizing the tile.
_TEMP_TILE_EQUIV = 8
_PALLAS_MIN_ELEMENTS = 256 * 1024   # below ~1 MiB f32, XLA fusion wins


def _device_config():
    """(num_parts, vmem_budget_bytes) chosen per TPU generation.

    num_parts > 1 only on v7x (2 TensorCores per chip); the extra leading axis
    is pure overhead on single-TC chips.  The budget stays inside the *default*
    scoped-VMEM limit of each generation (32 MiB on v6e/v7x, 16 MiB elsewhere),
    so no vmem_limit_bytes override is required.
    """
    try:
        kind = jax.devices()[0].device_kind.lower()
    except Exception:
        kind = ""
    is_v7 = ("v7" in kind) or ("tpu7" in kind)
    is_v6 = ("v6" in kind) or ("tpu6" in kind)
    num_parts = 2 if is_v7 else 1
    budget = (24 if (is_v6 or is_v7) else 11) * 1024 * 1024
    return num_parts, budget


def _to_lane_rows(x):
    """Flatten to a lane-dense (rows, LANES) 2-D view.

    Pads only to the next multiple of LANES (<= 511 zeros, which contribute 0
    to every sum); aligned sizes stay a free reshape.  Row-level raggedness is
    handled in-kernel with an iota mask instead of padding whole tiles.
    """
    flat = x.reshape(-1)
    pad = (-flat.shape[0]) % LANES
    if pad:
        flat = jnp.pad(flat, (0, pad))
    return flat.reshape(-1, LANES)


def _round_up(v, m):
    return -(-v // m) * m


def _pick_tile_rows(itemsizes, budget_bytes, rows):
    """Largest tile (multiple of 8 rows) whose double-buffered input DMAs plus
    in-kernel f32 temporaries fit the per-generation VMEM budget."""
    per_row = 2 * LANES * sum(itemsizes) + _TEMP_TILE_EQUIV * LANES * _F32_BYTES
    tr = budget_bytes // per_row
    tr = max(_SUBLANES, (tr // _SUBLANES) * _SUBLANES)
    tr = min(tr, 4096, _round_up(rows, _SUBLANES))
    return int(tr)


# ---- per-tile contribution functions (run on f32 tiles inside the kernel) ----
def _contrib_coarse(rc, tg):
    return (jnp.abs(rc - tg),)


def _contrib_fine_sq(rf, tg):
    d = rf - tg
    return (d * d,)


def _contrib_fine_edge(rf, tg, e):
    d = rf - tg
    return (jnp.abs(d), d * d * e)


def _contrib_fused(rc, rf, tg):
    df = rf - tg
    return (jnp.abs(rc - tg), df * df)


def _contrib_fused_edge(rc, rf, tg, e):
    df = rf - tg
    return (jnp.abs(rc - tg), jnp.abs(df), df * df * e)


def _run_reduction(arrays, contrib_fn, num_outputs):
    """Streams `arrays` (same broadcast shape) once through a fused Pallas
    reduction.  Returns `num_outputs` scalar f32 sums plus the true element
    count."""
    n = int(arrays[0].size)
    num_parts, budget = _device_config()
    ins = [_to_lane_rows(a) for a in arrays]
    rows = int(ins[0].shape[0])
    n_in = len(ins)

    tile_rows = _pick_tile_rows([a.dtype.itemsize for a in ins], budget, rows)
    num_tiles = -(-rows // tile_rows)
    if num_tiles < num_parts:
        num_parts = 1
    tiles_per_part = -(-num_tiles // num_parts)
    # Mask needed if the last tile is ragged, or parts re-visit clamped tiles
    # because num_tiles does not divide evenly across parts.
    need_mask = (num_tiles * tile_rows != rows) or (
        num_parts * tiles_per_part != num_tiles)

    def kernel(*refs):
        in_refs = refs[:n_in]
        out_refs = refs[n_in:]
        if num_parts > 1:
            p = pl.program_id(0)
            t = pl.program_id(1)
            nominal_tile = p * tiles_per_part + t
        else:
            t = pl.program_id(0)
            nominal_tile = t

        @pl.when(t == 0)
        def _init():
            for o in out_refs:
                o[...] = jnp.zeros_like(o)

        vals = [r[...].astype(jnp.float32) for r in in_refs]
        contribs = list(contrib_fn(*vals))
        if need_mask:
            row_ids = nominal_tile * tile_rows + jax.lax.broadcasted_iota(
                jnp.int32, (tile_rows, LANES), 0)
            valid = row_ids < rows
            contribs = [jnp.where(valid, c, 0.0) for c in contribs]
        for o, c in zip(out_refs, contribs):
            # Fold tile rows into 8 sublanes: layout-preserving leading-dim
            # split + elementwise VPU adds, accumulated into the resident
            # output block.
            o[...] += jnp.sum(
                c.reshape(tile_rows // _SUBLANES, _SUBLANES, LANES), axis=0)

    if num_parts > 1:
        # TODO(synk): if plain "parallel" does not shard the leading axis over
        # both v7x TensorCores, switch it to pltpu.CORE_PARALLEL.
        grid = (num_parts, tiles_per_part)
        semantics = ("parallel", "arbitrary")
        last_tile = num_tiles - 1

        def in_map(p, t):
            # Clamp so over-hanging steps of the last part re-read a valid
            # tile; their contribution is zeroed by the row mask.
            return (jnp.minimum(p * tiles_per_part + t, last_tile), 0)

        def out_map(p, t):
            return (p, 0)
    else:
        grid = (num_tiles,)
        semantics = ("arbitrary",)

        def in_map(t):
            return (t, 0)

        def out_map(t):
            return (0, 0)

    in_block = pl.BlockSpec((tile_rows, LANES), in_map)
    out_block = pl.BlockSpec((_SUBLANES, LANES), out_map)
    out_shape = tuple(
        jax.ShapeDtypeStruct((num_parts * _SUBLANES, LANES), jnp.float32)
        for _ in range(num_outputs))
    bytes_in = sum(int(a.size) * a.dtype.itemsize for a in ins)
    bytes_out = num_outputs * num_parts * _SUBLANES * LANES * _F32_BYTES

    outs = pl.pallas_call(
        kernel,
        out_shape=out_shape,
        grid_spec=pltpu.PrefetchScalarGridSpec(
            num_scalar_prefetch=0,
            grid=grid,
            in_specs=[in_block] * n_in,
            out_specs=[out_block] * num_outputs,
        ),
        compiler_params=pltpu.CompilerParams(dimension_semantics=semantics),
        cost_estimate=pl.CostEstimate(
            flops=(1 + 2 * num_outputs) * rows * LANES,
            transcendentals=0,
            bytes_accessed=bytes_in + bytes_out),
    )(*ins)
    if not isinstance(outs, (tuple, list)):
        outs = (outs,)
    return tuple(jnp.sum(o) for o in outs) + (n,)


def nerf_t_loss(inputs, targets, BG_edge=None, coef=1.0, lambda_u=0.01,
                *, min_pallas_elements=_PALLAS_MIN_ELEMENTS):
    """Pallas equivalent of NerfTLoss(coef, lambda_u).forward(inputs, targets, BG_edge).

    `lambda_u` is kept for signature parity; like the reference, it is unused
    in the forward pass.
    """
    del lambda_u

    shape_c = jnp.broadcast_shapes(inputs['rgb_coarse'].shape, targets.shape)
    rc = jnp.broadcast_to(inputs['rgb_coarse'], shape_c)
    tc = jnp.broadcast_to(targets, shape_c)
    n_c = int(math.prod(shape_c))

    has_fine = 'rgb_fine' in inputs
    edge = None
    n_f = 0
    if has_fine:
        shape_f = jnp.broadcast_shapes(inputs['rgb_fine'].shape, targets.shape)
        rf = jnp.broadcast_to(inputs['rgb_fine'], shape_f)
        tf = jnp.broadcast_to(targets, shape_f)
        if BG_edge is not None:
            edge = jnp.broadcast_to(BG_edge, shape_f)
        n_f = int(math.prod(shape_f))

    ret = {}
    if max(n_c, n_f) < min_pallas_elements:
        # Small inputs: a Pallas pipeline launch costs more than it saves.
        ret['c_l'] = 0.5 * jnp.mean(jnp.abs(rc.astype(jnp.float32)
                                            - tc.astype(jnp.float32)))
        if has_fine:
            d = rf.astype(jnp.float32) - tf.astype(jnp.float32)
            if edge is not None:
                ret['f_l'] = (2.0 * jnp.mean(d * d * edge.astype(jnp.float32))
                              + 2.0 * jnp.mean(jnp.abs(d)))
            else:
                ret['f_l'] = 4.0 * jnp.mean(d * d)
        return {k: coef * v for k, v in ret.items()}

    if has_fine and shape_f == shape_c:
        # Fused single pass: `targets` is streamed from HBM exactly once.
        if edge is not None:
            abs_c, abs_f, wsq_f, n = _run_reduction(
                [rc, rf, tc, edge], _contrib_fused_edge, 3)
            ret['c_l'] = 0.5 * abs_c / n
            ret['f_l'] = 2.0 * (wsq_f + abs_f) / n
        else:
            abs_c, sq_f, n = _run_reduction([rc, rf, tc], _contrib_fused, 2)
            ret['c_l'] = 0.5 * abs_c / n
            ret['f_l'] = 4.0 * sq_f / n
    else:
        abs_c, n = _run_reduction([rc, tc], _contrib_coarse, 1)
        ret['c_l'] = 0.5 * abs_c / n
        if has_fine:
            if edge is not None:
                abs_f, wsq_f, nf = _run_reduction(
                    [rf, tf, edge], _contrib_fine_edge, 2)
                ret['f_l'] = 2.0 * (wsq_f + abs_f) / nf
            else:
                sq_f, nf = _run_reduction([rf, tf], _contrib_fine_sq, 1)
                ret['f_l'] = 4.0 * sq_f / nf
    return {k: coef * v for k, v in ret.items()}


def _nerf_t_loss_ref(inputs, targets, BG_edge=None, coef=1.0):
    # Pure-JAX reference mirroring the PyTorch code.
    ret = {}
    ret['c_l'] = 0.5 * jnp.mean(jnp.abs(inputs['rgb_coarse'] - targets))
    if 'rgb_fine' in inputs:
        d = inputs['rgb_fine'] - targets
        if BG_edge is not None:
            ret['f_l'] = (2.0 * jnp.mean(d * d * BG_edge)
                          + 2.0 * jnp.mean(jnp.abs(d)))
        else:
            ret['f_l'] = 4.0 * jnp.mean(d * d)
    return {k: coef * v for k, v in ret.items()}


def _check(out, ref, keys):
    for k in keys:
        assert jnp.allclose(out[k], ref[k], rtol=1e-4, atol=1e-6), (k, out[k], ref[k])


if __name__ == "__main__":
    key = jax.random.PRNGKey(0)
    k1, k2, k3, k4 = jax.random.split(key, 4)

    # Small NeRF-style batch: (rays, rgb).
    n_rays, chans = 1024, 3
    rgb_coarse = jax.random.normal(k1, (n_rays, chans), dtype=jnp.float32)
    rgb_fine = jax.random.normal(k2, (n_rays, chans), dtype=jnp.float32)
    targets = jax.random.normal(k3, (n_rays, chans), dtype=jnp.float32)
    bg_edge = (jax.random.uniform(k4, (n_rays, chans)) > 0.5).astype(jnp.float32)
    inputs = {'rgb_coarse': rgb_coarse, 'rgb_fine': rgb_fine}

    # 1) Fused 3-input Pallas kernel (no BG_edge), forced at small size.
    out1 = jax.block_until_ready(
        nerf_t_loss(inputs, targets, coef=1.0, min_pallas_elements=0))
    ref1 = _nerf_t_loss_ref(inputs, targets, coef=1.0)
    _check(out1, ref1, ['c_l', 'f_l'])

    # 2) Fused 4-input Pallas kernel (BG_edge) with a non-unit coef.
    out2 = jax.block_until_ready(
        nerf_t_loss(inputs, targets, BG_edge=bg_edge, coef=2.0,
                    min_pallas_elements=0))
    ref2 = _nerf_t_loss_ref(inputs, targets, BG_edge=bg_edge, coef=2.0)
    _check(out2, ref2, ['c_l', 'f_l'])

    # 3) Coarse-only kernel with a ragged, non-512-aligned flat size.
    n_rag = 1000
    rc_rag = jax.random.normal(k1, (n_rag, chans), dtype=jnp.float32)
    tg_rag = jax.random.normal(k3, (n_rag, chans), dtype=jnp.float32)
    out3 = jax.block_until_ready(
        nerf_t_loss({'rgb_coarse': rc_rag}, tg_rag, min_pallas_elements=0))
    ref3 = _nerf_t_loss_ref({'rgb_coarse': rc_rag}, tg_rag)
    _check(out3, ref3, ['c_l'])
    assert 'f_l' not in out3

    # 4) Larger batch: takes the Pallas path with the default threshold and
    #    spans multiple grid tiles (exercises resident-output accumulation
    #    plus the ragged-tile mask).
    n_big = 131072
    rc_b = jax.random.normal(k1, (n_big, chans), dtype=jnp.float32)
    rf_b = jax.random.normal(k2, (n_big, chans), dtype=jnp.float32)
    tg_b = jax.random.normal(k3, (n_big, chans), dtype=jnp.float32)
    eg_b = (jax.random.uniform(k4, (n_big, chans)) > 0.5).astype(jnp.float32)
    inputs_b = {'rgb_coarse': rc_b, 'rgb_fine': rf_b}
    out4 = jax.block_until_ready(
        nerf_t_loss(inputs_b, tg_b, BG_edge=eg_b, coef=1.0))
    ref4 = _nerf_t_loss_ref(inputs_b, tg_b, BG_edge=eg_b, coef=1.0)
    _check(out4, ref4, ['c_l', 'f_l'])

    # 5) Small-input fallback path (pure XLA, no Pallas launch).
    out5 = jax.block_until_ready(nerf_t_loss(inputs, targets))
    ref5 = _nerf_t_loss_ref(inputs, targets)
    _check(out5, ref5, ['c_l', 'f_l'])

    print("KERNEL_OK")
</pallas_src>

<mosaic_0001>
module attributes {stable_mosaic.version = 11 : i64} {
  func.func @kernel(%arg0: i32, %arg1: memref<8x512xf32, #tpu.memory_space<vmem>>, %arg2: memref<8x512xf32, #tpu.memory_space<vmem>>, %arg3: memref<8x512xf32, #tpu.memory_space<vmem>>, %arg4: memref<8x512xf32, #tpu.memory_space<vmem>>, %arg5: memref<8x512xf32, #tpu.memory_space<vmem>>) attributes {dimension_semantics = [#tpu.dimension_semantics<arbitrary>], iteration_bounds = array<i64: 1>, scalar_prefetch = 0 : i64, scratch_operands = 0 : i64, tpu.core_type = #tpu.core_type<tc>, window_params = [{transform_indices = @transform_0, window_bounds = array<i64: 8, 512>}, {transform_indices = @transform_1, window_bounds = array<i64: 8, 512>}, {transform_indices = @transform_2, window_bounds = array<i64: 8, 512>}, {pipeline_mode = #tpu.pipeline_mode<synchronous>, transform_indices = @transform_3, window_bounds = array<i64: 8, 512>}, {pipeline_mode = #tpu.pipeline_mode<synchronous>, transform_indices = @transform_4, window_bounds = array<i64: 8, 512>}]} {
    %c0_i32 = arith.constant 0 : i32
    %0 = arith.cmpi eq, %arg0, %c0_i32 : i32
    %1 = arith.extui %0 : i1 to i32
    %c0_i32_0 = arith.constant 0 : i32
    %2 = arith.cmpi ne, %1, %c0_i32_0 : i32
    scf.if %2 {
      %cst_17 = arith.constant 0.000000e+00 : f32
      %30 = vector.broadcast %cst_17 : f32 to vector<8x512xf32>
      %c0_18 = arith.constant 0 : index
      %c0_19 = arith.constant 0 : index
      %31 = vector.load %arg4[%c0_18, %c0_19] : memref<8x512xf32, #tpu.memory_space<vmem>>, vector<8x512xf32>
      tpu.vector_store %arg4[%c0_18, %c0_19], %30 {strides = array<i32>} : memref<8x512xf32, #tpu.memory_space<vmem>>, vector<8x512xf32>,
      %cst_20 = arith.constant 0.000000e+00 : f32
      %32 = vector.broadcast %cst_20 : f32 to vector<8x512xf32>
      %c0_21 = arith.constant 0 : index
      %c0_22 = arith.constant 0 : index
      %33 = vector.load %arg5[%c0_21, %c0_22] : memref<8x512xf32, #tpu.memory_space<vmem>>, vector<8x512xf32>
      tpu.vector_store %arg5[%c0_21, %c0_22], %32 {strides = array<i32>} : memref<8x512xf32, #tpu.memory_space<vmem>>, vector<8x512xf32>,
    } else {
    }
    %c0 = arith.constant 0 : index
    %c0_1 = arith.constant 0 : index
    %3 = vector.load %arg1[%c0, %c0_1] : memref<8x512xf32, #tpu.memory_space<vmem>>, vector<8x512xf32>
    %c0_2 = arith.constant 0 : index
    %c0_3 = arith.constant 0 : index
    %4 = vector.load %arg2[%c0_2, %c0_3] : memref<8x512xf32, #tpu.memory_space<vmem>>, vector<8x512xf32>
    %c0_4 = arith.constant 0 : index
    %c0_5 = arith.constant 0 : index
    %5 = vector.load %arg3[%c0_4, %c0_5] : memref<8x512xf32, #tpu.memory_space<vmem>>, vector<8x512xf32>
    %6 = arith.subf %4, %5 : vector<8x512xf32>
    %7 = arith.subf %3, %5 : vector<8x512xf32>
    %8 = math.absf %7 : vector<8x512xf32>
    %9 = arith.mulf %6, %6 : vector<8x512xf32>
    %c8_i32 = arith.constant 8 : i32
    %10 = arith.muli %arg0, %c8_i32 : i32
    %11 = tpu.iota {dimensions = array<i32: 0>} : vector<8x512xi32>
    %12 = vector.broadcast %10 : i32 to vector<8x512xi32>
    %13 = arith.addi %12, %11 : vector<8x512xi32>
    %c6_i32 = arith.constant 6 : i32
    %14 = vector.broadcast %c6_i32 : i32 to vector<8x512xi32>
    %15 = arith.cmpi slt, %13, %14 : vector<8x512xi32>
    %cst = arith.constant 0.000000e+00 : f32
    %16 = vector.broadcast %cst : f32 to vector<8x512xf32>
    %17 = arith.select %15, %8, %16 : vector<8x512xi1>, vector<8x512xf32>
    %cst_6 = arith.constant 0.000000e+00 : f32
    %18 = vector.broadcast %cst_6 : f32 to vector<8x512xf32>
    %19 = arith.select %15, %9, %18 : vector<8x512xi1>, vector<8x512xf32>
    %c0_7 = arith.constant 0 : index
    %c0_8 = arith.constant 0 : index
    %20 = vector.load %arg4[%c0_7, %c0_8] : memref<8x512xf32, #tpu.memory_space<vmem>>, vector<8x512xf32>
    %21 = vector.shape_cast %17 : vector<8x512xf32> to vector<1x8x512xf32>
    %cst_9 = arith.constant dense<0.000000e+00> : vector<8x512xf32>
    %22 = vector.multi_reduction <add>, %21, %cst_9 [0] : vector<1x8x512xf32> to vector<8x512xf32>
    %23 = arith.addf %20, %22 : vector<8x512xf32>
    %c0_10 = arith.constant 0 : index
    %c0_11 = arith.constant 0 : index
    %24 = vector.load %arg4[%c0_10, %c0_11] : memref<8x512xf32, #tpu.memory_space<vmem>>, vector<8x512xf32>
    tpu.vector_store %arg4[%c0_10, %c0_11], %23 {strides = array<i32>} : memref<8x512xf32, #tpu.memory_space<vmem>>, vector<8x512xf32>,
    %c0_12 = arith.constant 0 : index
    %c0_13 = arith.constant 0 : index
    %25 = vector.load %arg5[%c0_12, %c0_13] : memref<8x512xf32, #tpu.memory_space<vmem>>, vector<8x512xf32>
    %26 = vector.shape_cast %19 : vector<8x512xf32> to vector<1x8x512xf32>
    %cst_14 = arith.constant dense<0.000000e+00> : vector<8x512xf32>
    %27 = vector.multi_reduction <add>, %26, %cst_14 [0] : vector<1x8x512xf32> to vector<8x512xf32>
    %28 = arith.addf %25, %27 : vector<8x512xf32>
    %c0_15 = arith.constant 0 : index
    %c0_16 = arith.constant 0 : index
    %29 = vector.load %arg5[%c0_15, %c0_16] : memref<8x512xf32, #tpu.memory_space<vmem>>, vector<8x512xf32>
    tpu.vector_store %arg5[%c0_15, %c0_16], %28 {strides = array<i32>} : memref<8x512xf32, #tpu.memory_space<vmem>>, vector<8x512xf32>,
    return
  }
  func.func @transform_0(%arg0: i32) -> (i32, i32) {
    %c0_i32 = arith.constant 0 : i32
    %c0_i32_0 = arith.constant 0 : i32
    return %arg0, %c0_i32 : i32, i32
  }
  func.func @transform_1(%arg0: i32) -> (i32, i32) {
    %c0_i32 = arith.constant 0 : i32
    %c0_i32_0 = arith.constant 0 : i32
    return %arg0, %c0_i32 : i32, i32
  }
  func.func @transform_2(%arg0: i32) -> (i32, i32) {
    %c0_i32 = arith.constant 0 : i32
    %c0_i32_0 = arith.constant 0 : i32
    return %arg0, %c0_i32 : i32, i32
  }
  func.func @transform_3(%arg0: i32) -> (i32, i32) {
    %c0_i32 = arith.constant 0 : i32
    %c0_i32_0 = arith.constant 0 : i32
    %c0_i32_1 = arith.constant 0 : i32
    return %c0_i32, %c0_i32_0 : i32, i32
  }
  func.func @transform_4(%arg0: i32) -> (i32, i32) {
    %c0_i32 = arith.constant 0 : i32
    %c0_i32_0 = arith.constant 0 : i32
    %c0_i32_1 = arith.constant 0 : i32
    return %c0_i32, %c0_i32_0 : i32, i32
  }
}

</mosaic_0001>

<bundles_post_ra>
// kernel: tpu_custom_call.1
= control target key start
LH: loop header
LB: loop body
LE: loop exit
PB: predicated region body
PF: predicated region fallthrough
CT: control target
= control target key end

     0   :  { %10 = vsyncpa [#allocation3], 0  ;;  %s391_s0 = inlined_call_operand.hbm [shape: f32[6,512], index: 0, kind: input, shape index: {}]   ;;  %s392_s1 = inlined_call_operand.hbm [shape: f32[6,512], index: 1, kind: input, shape index: {}]   ;;  %s393_s2 = inlined_call_operand.hbm [shape: f32[6,512], index: 2, kind: input, shape index: {}]   ;;  %s394_s3 = inlined_call_operand.hbm [shape: f32[8,512], index: 3, kind: output, shape index: {0}]   ;;  %s395_s4 = inlined_call_operand.hbm [shape: f32[8,512], index: 4, kind: output, shape index: {1}]  }
   0x1   :  { %11 = vsyncpa [#allocation6], 0 }
   0x2   :  { %12 = vsyncpa [#allocation4], 0 }
   0x3   :  { %13 = vsyncpa [#allocation10], 0  ;;  %s293_s15 = smov [#allocation5]   ;;  %s294_s17 = smov [#allocation2]  }
   0x4   :  { %s30_s16 = sshll.u32 %s293_s15, 4  ;;  %s20_s18 = sshll.u32 %s294_s17, 4  ;;  %s31_s16 = int_to_ptr.vmem [resolvable:$true] %s30_s16  ;;  %s21_s18 = int_to_ptr.vmem [resolvable:$true] %s20_s18 }
   0x5   :  { %s175_s21 = scalar_lea.hbm %s392_s1, 512 }
   0x6   :  { %p176_p0 = scmp.ne.s32.totalorder %s392_s1, %s175_s21  ;;  %p179_p1 = scmp.lt.u32.totalorder %s175_s21, %s392_s1 }
   0x8   :  { %p181_p2 = pnand %p179_p1, %p176_p0 }
   0xa   :  { %184 = shalt.err (!%p181_p2)
}
   0xb   :  { %s185_s26 = scalar_lea.vmem %s31_s16, 512  ;;  %p190_p4 = scmp.lt.s32.totalorder %s31_s16, %s31_s16 }
   0xc   :  { %p186_p3 = scmp.ne.s32.totalorder %s31_s16, %s185_s26  ;;  %p191_p5 = scmp.lt.s32.totalorder %s185_s26, %s185_s26 }
   0xe   :  { %p192_p6 = por %p191_p5, %p190_p4 }
  0x10   :  { %p193_p7 = pnand %p192_p6, %p186_p3 }
  0x12   :  { %196 = shalt.err (!%p193_p7)
}
  0x13   :  { %33 = dma.hbm_to_vmem [thread:$0]  %s392_s1, 512, %s31_s16, [#allocation6]  }
  0x14   :  { %s197_s5 = scalar_lea.hbm %s391_s0, 512 }
  0x15   :  { %p198_p8 = scmp.ne.s32.totalorder %s391_s0, %s197_s5  ;;  %p201_p9 = scmp.lt.u32.totalorder %s197_s5, %s391_s0 }
  0x17   :  { %p203_p10 = pnand %p201_p9, %p198_p8 }
  0x19   :  { %206 = shalt.err (!%p203_p10)
}
  0x1a   :  { %s207_s10 = scalar_lea.vmem %s21_s18, 512  ;;  %p212_p12 = scmp.lt.s32.totalorder %s21_s18, %s21_s18 }
  0x1b   :  { %p208_p11 = scmp.ne.s32.totalorder %s21_s18, %s207_s10  ;;  %p213_p13 = scmp.lt.s32.totalorder %s207_s10, %s207_s10 }
  0x1d   :  { %p214_p0 = por %p213_p13, %p212_p12 }
  0x1f   :  { %p215_p1 = pnand %p214_p0, %p208_p11 }
  0x21   :  { %218 = shalt.err (!%p215_p1)
}
  0x22   :  { %23 = dma.hbm_to_vmem [thread:$0]  %s391_s0, 512, %s21_s18, [#allocation3]  }
  0x23   :  { %s295_s12 = smov [#allocation7]   ;;  %s219_s16 = scalar_lea.hbm %s393_s2, 512 }
  0x24   :  { %s40_s13 = sshll.u32 %s295_s12, 4  ;;  %p220_p2 = scmp.ne.s32.totalorder %s393_s2, %s219_s16  ;;  %s41_s13 = int_to_ptr.vmem [resolvable:$true] %s40_s13 }
  0x25   :  { %p223_p3 = scmp.lt.u32.totalorder %s219_s16, %s393_s2 }
  0x27   :  { %p225_p4 = pnand %p223_p3, %p220_p2 }
  0x29   :  { %228 = shalt.err (!%p225_p4)
}
  0x2a   :  { %s229_s22 = scalar_lea.vmem %s41_s13, 512  ;;  %p234_p6 = scmp.lt.s32.totalorder %s41_s13, %s41_s13 }
  0x2b   :  { %p230_p5 = scmp.ne.s32.totalorder %s41_s13, %s229_s22  ;;  %p235_p7 = scmp.lt.s32.totalorder %s229_s22, %s229_s22 }
  0x2d   :  { %p236_p8 = por %p235_p7, %p234_p6 }
  0x2f   :  { %p237_p9 = pnand %p236_p8, %p230_p5 }
  0x31   :  { %240 = shalt.err (!%p237_p9)
}
  0x32   :  { %43 = dma.hbm_to_vmem [thread:$0]  %s393_s2, 512, %s41_s13, [#allocation6]  }
  0x33   :  { %285 = dma.done.wait [#allocation3], 512  }
  0x34   :  { %286 = vsyncadd [#allocation3], 4294966784 }
  0x35   :  { %287 = dma.done.wait [#allocation6], 1024  }
  0x36   :  { %288 = vsyncadd [#allocation6], 4294966272  ;;  %v94_v0 = vlaneseq  ;;  %v65_v2 = vld [vmem:[#allocation2] sm:$0xff]  ;;  %v66_v4 = vld [vmem:[#allocation2 + $0x8] sm:$0xff]  ;;  %s296_s2 = smov [#allocation8]   ;;  %s297_s24 = smov [#allocation9]  }
  0x37   :  { %v73_v3 = vld [vmem:[#allocation7] sm:$0xff]  ;;  %v74_v6 = vld [vmem:[#allocation7 + $0x8] sm:$0xff]  ;;  %v67_v7 = vld [vmem:[#allocation2 + $0x10] sm:$0xff]  ;;  %s145_s23 = sshll.u32 %s296_s2, 4  ;;  %s155_s25 = sshll.u32 %s297_s24, 4  ;;  %s146_s23 = int_to_ptr.vmem [resolvable:$true] %s145_s23  ;;  %s156_s25 = int_to_ptr.vmem [resolvable:$true] %s155_s25 }
  0x38   :  { %v95_v1 = vshrl.u32 %v94_v0, 7  ;;  %v81_v5 = vsub.f32 %v65_v2, %v73_v3  ;;  %v75_v8 = vld [vmem:[#allocation7 + $0x10] sm:$0xff]  ;;  %v82_v9 = vsub.f32 %v66_v4, %v74_v6  ;;  %v68_v11 = vld [vmem:[#allocation2 + $0x18] sm:$0xff]  ;;  %v69_v13 = vld [vmem:[#allocation5] sm:$0xff]  ;;  %s241_s26 = scalar_lea.vmem %s146_s23, 512  ;;  %p246_p11 = scmp.lt.s32.totalorder %s146_s23, %s146_s23 }
  0x39   :  { %v83_v10 = vsub.f32 %v67_v7, %v75_v8  ;;  %v76_v12 = vld [vmem:[#allocation7 + $0x18] sm:$0xff]  ;;  %v77_v16 = vsub.f32 %v69_v13, %v73_v3  ;;  %v70_v17 = vld [vmem:[#allocation5 + $0x8] sm:$0xff]  ;;  %v71_v18 = vld [vmem:[#allocation5 + $0x10] sm:$0xff]  ;;  %p242_p10 = scmp.ne.s32.totalorder %s146_s23, %s241_s26  ;;  %p247_p12 = scmp.lt.s32.totalorder %s241_s26, %s241_s26 }
  0x3a   :  { %vm98_vm0 = vcmp.lt.s32.totalorder %v95_v1, 6  ;;  %v85_v14 = vand.u32 2147483647, %v81_v5  ;;  %v84_v15 = vsub.f32 %v68_v11, %v76_v12  ;;  %v72_v19 = vld [vmem:[#allocation5 + $0x18] sm:$0xff]  ;;  %v86_v20 = vand.u32 2147483647, %v82_v9 }
  0x3b   :  { %v87_v21 = vand.u32 2147483647, %v83_v10  ;;  %v78_v22 = vsub.f32 %v70_v17, %v74_v6  ;;  %v79_v23 = vsub.f32 %v71_v18, %v75_v8  ;;  %v89_v26 = vmul.f32 %v77_v16, %v77_v16  ;;  %p248_p13 = por %p247_p12, %p246_p11 }
  0x3c   :  { %v99_v24 = vsel %vm98_vm0, %v85_v14, 0.0  ;;  %v88_v25 = vand.u32 2147483647, %v84_v15  ;;  %v80_v27 = vsub.f32 %v72_v19, %v76_v12  ;;  %v100_v28 = vsel %vm98_vm0, %v86_v20, 0.0 }
  0x3d   :  { %v101_v29 = vsel %vm98_vm0, %v87_v21, 0.0  ;;  %v90_v30 = vmul.f32 %v78_v22, %v78_v22  ;;  %v103_v32 = vsel %vm98_vm0, %v89_v26, 0.0  ;;  %119 = vst [vmem:[#allocation8] sm:$0xff] %v99_v24  ;;  %v91_v34 = vmul.f32 %v79_v23, %v79_v23  ;;  %120 = vst [vmem:[#allocation8 + $0x8] sm:$0xff] %v100_v28  ;;  %p249_p0 = pnand %p248_p13, %p242_p10 }
  0x3e   :  { %v102_v31 = vsel %vm98_vm0, %v88_v25, 0.0  ;;  %121 = vst [vmem:[#allocation8 + $0x10] sm:$0xff] %v101_v29  ;;  %v92_v35 = vmul.f32 %v80_v27, %v80_v27  ;;  %135 = vst [vmem:[#allocation9] sm:$0xff] %v103_v32 }
  0x3f   :  { %v104_v33 = vsel %vm98_vm0, %v90_v30, 0.0  ;;  %122 = vst [vmem:[#allocation8 + $0x18] sm:$0xff] %v102_v31  ;;  %v105_v36 = vsel %vm98_vm0, %v91_v34, 0.0 }
  0x40   :  { %136 = vst [vmem:[#allocation9 + $0x8] sm:$0xff] %v104_v33  ;;  %v106_v37 = vsel %vm98_vm0, %v92_v35, 0.0 }
  0x41   :  { %252 = shalt.err (!%p249_p0)
}
  0x42   :  { %s253_s29 = scalar_lea.hbm %s394_s3, 512 }
  0x43   :  { %p254_p1 = scmp.ne.s32.totalorder %s394_s3, %s253_s29  ;;  %p257_p2 = scmp.lt.u32.totalorder %s253_s29, %s394_s3 }
  0x45   :  { %p259_p3 = pnand %p257_p2, %p254_p1 }
  0x47   :  { %262 = shalt.err (!%p259_p3)
}
  0x48   :  { %148 = dma.vmem_to_hbm [thread:$0]  %s146_s23, 512, %s394_s3, [#allocation4]   ;;  %137 = vst [vmem:[#allocation9 + $0x10] sm:$0xff] %v105_v36  ;;  %138 = vst [vmem:[#allocation9 + $0x18] sm:$0xff] %v106_v37 }
  0x49   :  { %s263_s10 = scalar_lea.vmem %s156_s25, 512  ;;  %p268_p5 = scmp.lt.s32.totalorder %s156_s25, %s156_s25 }
  0x4a   :  { %p264_p4 = scmp.ne.s32.totalorder %s156_s25, %s263_s10  ;;  %p269_p6 = scmp.lt.s32.totalorder %s263_s10, %s263_s10 }
  0x4c   :  { %p270_p7 = por %p269_p6, %p268_p5 }
  0x4e   :  { %p271_p8 = pnand %p270_p7, %p264_p4 }
  0x50   :  { %274 = shalt.err (!%p271_p8)
}
  0x51   :  { %s275_s12 = scalar_lea.hbm %s395_s4, 512 }
  0x52   :  { %p276_p9 = scmp.ne.s32.totalorder %s395_s4, %s275_s12  ;;  %p279_p10 = scmp.lt.u32.totalorder %s275_s12, %s395_s4 }
  0x54   :  { %p281_p11 = pnand %p279_p10, %p276_p9 }
  0x56   :  { %284 = shalt.err (!%p281_p11)
}
  0x57   :  { %158 = dma.vmem_to_hbm [thread:$0]  %s156_s25, 512, %s395_s4, [#allocation10]  }
  0x58   :  { %289 = dma.done.wait [#allocation4], 512  }
  0x59   :  { %290 = vsyncadd [#allocation4], 4294966784 }
  0x5a   :  { %291 = dma.done.wait [#allocation10], 512  }
  0x5b   :  { %292 = vsyncadd [#allocation10], 4294966784 }
  0x5c   :  { %165 = vsyncpa [#allocation3], 1 }
  0x5d   :  { %166 = vsyncpa [#allocation6], 1 }
  0x5e   :  { %167 = vsyncpa [#allocation4], 1 }
  0x5f   :  { %168 = vsyncpa [#allocation10], 1 }

</bundles_post_ra>
